<compile_context>
chip_gen: v7x
topology: tpu7x:2x2x1
jax: 0.10.0
libtpu: 0.0.40
codegen_flags: <defaults>
</compile_context>

<pallas_src>
import math
import numpy as np

import jax
import jax.numpy as jnp
from jax import lax
from jax.experimental import pallas as pl
from jax.experimental.pallas import tpu as pltpu

LANE = 128  # TPU lane width; samples are packed along this axis.


def init_pe(length, d_model):
    """Sinusoidal positional encoding, identical to ODEFunc.init_pe."""
    position = jnp.arange(length, dtype=jnp.float32)[:, None]
    div_term = jnp.exp(jnp.arange(0, d_model, 2, dtype=jnp.float32)
                       * -(math.log(10000.0) / d_model))
    pe = jnp.zeros((length, d_model), dtype=jnp.float32)
    pe = pe.at[:, 0::2].set(jnp.sin(position * div_term))
    pe = pe.at[:, 1::2].set(jnp.cos(position * div_term))
    return pe


def _odefunc_kernel(x_ref, pe_ref, gt_ref, w_ref, b_ref, o_ref):
    """One grid step = one (nb*C, 128) lane-dense slab of packed samples.

    x_ref : (nb*C, 128)   rows = (group, channel); 128//V samples per lane group
    pe_ref: (128, 128)    chunk-periodic PE tile (zeros if PE added in wrapper)
    gt_ref: (128, 128)    kron(I_{128//V}, A^T), resident
    w_ref : (3, 128, 128) kron(I_{128//C}, W1/W2/Wp), resident
    b_ref : (3, 128, 128) biases tiled over sublane groups, broadcast over lanes
    o_ref : (nb*C, 128)
    """
    cdt = x_ref.dtype                    # MXU-input dtype (f32 or bf16)
    n_chunks = x_ref.shape[0] // LANE    # static

    def leaky(y):                        # nn.LeakyReLU, slope 0.01 (VALU max)
        return jnp.maximum(y, 0.01 * y)

    def body(q, carry):
        r0 = pl.multiple_of(q * LANE, LANE)
        y = x_ref[pl.ds(r0, LANE), :] + pe_ref[...]                    # add PE
        # graph mixing: einsum('vu,ncu->ncv', A, x) == y @ kron(I, A^T)
        y = jnp.dot(y, gt_ref[...], preferred_element_type=jnp.float32)
        # conv1 (1x1) + LeakyReLU: block-diag kron(I, W1) acts per lane group
        y = leaky(jnp.dot(w_ref[0], y.astype(cdt),
                          preferred_element_type=jnp.float32) + b_ref[0])
        # second graph mixing
        y = jnp.dot(y.astype(cdt), gt_ref[...],
                    preferred_element_type=jnp.float32)
        # conv2 + LeakyReLU
        y = leaky(jnp.dot(w_ref[1], y.astype(cdt),
                          preferred_element_type=jnp.float32) + b_ref[1])
        # proj (no activation)
        y = jnp.dot(w_ref[2], y.astype(cdt),
                    preferred_element_type=jnp.float32) + b_ref[2]
        o_ref[pl.ds(r0, LANE), :] = y.astype(o_ref.dtype)
        return carry

    lax.fori_loop(0, n_chunks, body, 0, unroll=True)


def ode_func_forward(t, x, A, params, temporal_pe, T, *,
                     groups_per_step=128, compute_dtype=jnp.float32):
    """ODEFunc.forward.  x: (B, C, V) with B = b*T (PyTorch NCW layout).

    compute_dtype=jnp.bfloat16 halves HBM x traffic and doubles MXU rate on
    v6e/v7x (accumulation stays f32; validate at solver-output level before
    adopting).  groups_per_step controls the per-grid-step payload
    (~nb*C*128*4 bytes; default ~512 KiB for C=8, f32).
    """
    B, C, V = x.shape
    assert B % T == 0, "batch must be a multiple of T (x is (b*T, C, V))"
    assert LANE % V == 0, "num_nodes must divide 128"
    assert LANE % C == 0, "dim must divide 128"
    # TODO(synk): pad the node / channel axes when V or C does not divide 128.
    spg = LANE // V                       # samples packed per 128-lane group
    assert B % spg == 0, "batch must be a multiple of 128 // num_nodes"
    G = B // spg                          # number of lane groups
    chunk_g = LANE // C                   # lane groups per 128-sublane chunk
    b_outer = B // T
    w1, b1, w2, b2, wp, bp = params

    # ---------------- positional encoding ----------------
    t0 = jnp.asarray(t).astype(jnp.int32)          # truncation matches int(t)
    pe_rows = lax.dynamic_slice_in_dim(temporal_pe, t0, T, axis=0)      # (T, C)

    # PE tile is chunk-periodic (same for every 128-row chunk) iff
    # T | spg * chunk_g; then it is a single resident kernel input.
    pe_in_kernel = (spg * chunk_g) % T == 0
    if pe_in_kernel:
        m = np.arange(chunk_g)                     # group-within-chunk (static)
        j = np.arange(spg)                         # sample-within-group
        ti = (m[:, None] * spg + j[None, :]) % T   # (chunk_g, spg) static
        pe_sel = pe_rows[ti]                                  # (chunk_g, spg, C)
        pe_big = (jnp.repeat(pe_sel, V, axis=1)               # (chunk_g, 128, C)
                    .transpose(0, 2, 1).reshape(LANE, LANE))
        x_pe = x
    else:
        pe_big = jnp.zeros((LANE, LANE), dtype=jnp.float32)
        x_pe = (x.reshape(b_outer, T, C, V)
                + pe_rows[None, :, :, None].astype(x.dtype)).reshape(B, C, V)
    pe_big = pe_big.astype(compute_dtype)

    # ---------------- lane-dense fold ----------------
    # xk[g, c, j*V + v] = x[g*spg + j, c, v]
    # TODO(synk): keep this packed layout persistent across ODE-solver
    # evaluations (fold/unfold once outside the integrator) to drop the extra
    # HBM pass per call; not possible here without changing the interface.
    xk = (x_pe.reshape(G, spg, C, V).transpose(0, 2, 1, 3)
              .reshape(G, C, LANE).astype(compute_dtype))

    # ---------------- block-size / grid selection ----------------
    def rup(a, mlt):
        return -(-a // mlt) * mlt

    itemsz = jnp.dtype(compute_dtype).itemsize + jnp.dtype(x.dtype).itemsize
    bytes_per_group = C * LANE * itemsz            # in + out bytes per group
    max_nb_vmem = max(chunk_g,
                      ((8 << 20) // (2 * bytes_per_group)) // chunk_g * chunk_g)

    nb = rup(max(1, min(groups_per_step, G)), chunk_g)   # multiple of chunk_g
    nb = min(nb, max_nb_vmem)
    Gp = rup(G, nb)
    grid_n = Gp // nb
    # v7x has 2 TensorCores: prefer >= 2 grid steps when there is enough work.
    if grid_n == 1 and nb > chunk_g and G > chunk_g:
        nb_half = rup(nb // 2, chunk_g)
        if rup(G, nb_half) // nb_half >= 2:
            nb = nb_half
            Gp = rup(G, nb)
            grid_n = Gp // nb
    # Keep the grid even (cheap: at most one padded block of work).
    if grid_n > 1 and grid_n % 2 == 1:
        grid_n += 1
        Gp = grid_n * nb

    if Gp > G:
        xk = jnp.concatenate(
            [xk, jnp.zeros((Gp - G, C, LANE), xk.dtype)], axis=0)
    xk2 = xk.reshape(Gp * C, LANE)                 # flat lane-dense slab

    # ---------------- resident operands ----------------
    gt = jnp.kron(jnp.eye(spg, dtype=jnp.float32),
                  A.T.astype(jnp.float32)).astype(compute_dtype)    # (128, 128)
    eye_c = jnp.eye(chunk_g, dtype=jnp.float32)
    w_big = jnp.stack([jnp.kron(eye_c, w.astype(jnp.float32))
                       for w in (w1, w2, wp)]).astype(compute_dtype)  # (3,128,128)
    b_rows = jnp.tile(jnp.stack([b1, b2, bp]).astype(jnp.float32),
                      (1, chunk_g))                                   # (3, 128)
    b_big = jnp.broadcast_to(b_rows[:, :, None], (3, LANE, LANE))     # f32

    rows = nb * C                                   # sublane rows per grid step
    ok = pl.pallas_call(
        _odefunc_kernel,
        out_shape=jax.ShapeDtypeStruct((Gp * C, LANE), x.dtype),
        grid=(grid_n,),
        in_specs=[
            pl.BlockSpec((rows, LANE), lambda i: (i, 0)),       # x slab
            pl.BlockSpec((LANE, LANE), lambda i: (0, 0)),       # PE tile
            pl.BlockSpec((LANE, LANE), lambda i: (0, 0)),       # kron(I, A^T)
            pl.BlockSpec((3, LANE, LANE), lambda i: (0, 0, 0)),  # conv weights
            pl.BlockSpec((3, LANE, LANE), lambda i: (0, 0, 0)),  # biases
        ],
        out_specs=pl.BlockSpec((rows, LANE), lambda i: (i, 0)),
        compiler_params=pltpu.CompilerParams(
            dimension_semantics=("parallel",)),
    )(xk2, pe_big, gt, w_big, b_big)

    # ---------------- unfold back to (B, C, V) ----------------
    out = (ok.reshape(Gp, C, spg, V)[:G]
             .transpose(0, 2, 1, 3).reshape(B, C, V))
    return out


def ode_func_reference(t, x, A, params, temporal_pe, T):
    """Pure-JAX reference mirroring the PyTorch forward."""
    B, C, V = x.shape
    b = B // T
    w1, b1, w2, b2, wp, bp = params
    t0 = jnp.asarray(t).astype(jnp.int32)
    pe = lax.dynamic_slice_in_dim(temporal_pe, t0, T, axis=0)           # (T, C)
    x = (x.reshape(b, T, C, V) + pe[None, :, :, None]).reshape(B, C, V)
    amix = lambda y: jnp.einsum('vu,ncu->ncv', A, y)
    conv = lambda w, bb, y: jnp.einsum('oc,ncv->nov', w, y) + bb[None, :, None]
    leaky = lambda y: jnp.where(y >= 0, y, 0.01 * y)
    x = amix(x)
    x = leaky(conv(w1, b1, x))
    x = amix(x)
    x = leaky(conv(w2, b2, x))
    x = conv(wp, bp, x)
    return x


if __name__ == "__main__":
    dim = 8      # C : channels / d_model
    N = 16       # V : number of graph nodes
    T = 8        # time steps folded into the batch dimension
    b = 4        # outer batch
    B = b * T    # 32 samples
    t = 3.0      # scalar ODE time

    key = jax.random.PRNGKey(0)
    kx, ka, k1, k2, k3, k4, k5, k6 = jax.random.split(key, 8)
    x = jax.random.normal(kx, (B, dim, N), dtype=jnp.float32)
    A = jax.random.normal(ka, (N, N), dtype=jnp.float32) / math.sqrt(N)

    # Conv1d weights (out, in, 1) -> (out, in).
    w1 = jax.random.normal(k1, (dim, dim), dtype=jnp.float32) * 0.2
    b1 = jax.random.normal(k2, (dim,), dtype=jnp.float32) * 0.1
    w2 = jax.random.normal(k3, (dim, dim), dtype=jnp.float32) * 0.2
    b2 = jax.random.normal(k4, (dim,), dtype=jnp.float32) * 0.1
    wp = jax.random.normal(k5, (dim, dim), dtype=jnp.float32) * 0.2
    bp = jax.random.normal(k6, (dim,), dtype=jnp.float32) * 0.1
    params = (w1, b1, w2, b2, wp, bp)

    temporal_pe = init_pe(T + N, dim)   # (T + N, dim), as in __init__

    ref = ode_func_reference(t, x, A, params, temporal_pe, T)

    # f32 path (bit-accurate).
    out = jax.block_until_ready(
        ode_func_forward(t, x, A, params, temporal_pe, T))
    assert out.shape == (B, dim, N)
    err = float(jnp.max(jnp.abs(out - ref)))
    assert err < 1e-3, f"f32 max abs err {err}"

    # bf16 MXU-input path (v6e/v7x HBM-traffic optimization), f32 accumulate.
    out_bf = jax.block_until_ready(
        ode_func_forward(t, x, A, params, temporal_pe, T,
                         compute_dtype=jnp.bfloat16))
    err_bf = float(jnp.max(jnp.abs(out_bf - ref)))
    assert err_bf < 0.25, f"bf16 max abs err {err_bf}"

    print("KERNEL_OK")
</pallas_src>

<mosaic_0001>
module attributes {stable_mosaic.version = 11 : i64} {
  func.func @_odefunc_kernel(%arg0: i32, %arg1: memref<128x128xf32, #tpu.memory_space<vmem>>, %arg2: memref<128x128xf32, #tpu.memory_space<vmem>>, %arg3: memref<128x128xf32, #tpu.memory_space<vmem>>, %arg4: memref<3x128x128xf32, #tpu.memory_space<vmem>>, %arg5: memref<3x128x128xf32, #tpu.memory_space<vmem>>, %arg6: memref<128x128xf32, #tpu.memory_space<vmem>>) attributes {dimension_semantics = [#tpu.dimension_semantics<parallel>], iteration_bounds = array<i64: 1>, scalar_prefetch = 0 : i64, scratch_operands = 0 : i64, tpu.core_type = #tpu.core_type<tc>, window_params = [{transform_indices = @transform_0, window_bounds = array<i64: 128, 128>}, {pipeline_mode = #tpu.pipeline_mode<synchronous>, transform_indices = @transform_1, window_bounds = array<i64: 128, 128>}, {pipeline_mode = #tpu.pipeline_mode<synchronous>, transform_indices = @transform_2, window_bounds = array<i64: 128, 128>}, {pipeline_mode = #tpu.pipeline_mode<synchronous>, transform_indices = @transform_3, window_bounds = array<i64: 3, 128, 128>}, {pipeline_mode = #tpu.pipeline_mode<synchronous>, transform_indices = @transform_4, window_bounds = array<i64: 3, 128, 128>}, {transform_indices = @transform_5, window_bounds = array<i64: 128, 128>}]} {
    %c0_i32 = arith.constant 0 : i32
    %c128_i32 = arith.constant 128 : i32
    %0 = arith.muli %c0_i32, %c128_i32 : i32
    %1 = tpu.assume_multiple %0, 128 : i32
    %2 = arith.index_cast %1 : i32 to index
    %c0 = arith.constant 0 : index
    %3 = vector.load %arg1[%2, %c0] : memref<128x128xf32, #tpu.memory_space<vmem>>, vector<128x128xf32>
    %c0_0 = arith.constant 0 : index
    %c0_1 = arith.constant 0 : index
    %4 = vector.load %arg2[%c0_0, %c0_1] : memref<128x128xf32, #tpu.memory_space<vmem>>, vector<128x128xf32>
    %5 = arith.addf %3, %4 : vector<128x128xf32>
    %c0_2 = arith.constant 0 : index
    %c0_3 = arith.constant 0 : index
    %6 = vector.load %arg3[%c0_2, %c0_3] : memref<128x128xf32, #tpu.memory_space<vmem>>, vector<128x128xf32>
    %cst = arith.constant dense<0.000000e+00> : vector<128x128xf32>
    %7 = tpu.matmul %5, %6, %cst {dimension_numbers = #tpu.dot_dimension_numbers<[1], [0], [0], [1], [0, 0, 1, 1], [], []>} : vector<128x128xf32>, vector<128x128xf32>, vector<128x128xf32> -> vector<128x128xf32>
    %c0_4 = arith.constant 0 : index
    %c0_5 = arith.constant 0 : index
    %c0_6 = arith.constant 0 : index
    %8 = vector.load %arg4[%c0_4, %c0_5, %c0_6] : memref<3x128x128xf32, #tpu.memory_space<vmem>>, vector<1x128x128xf32>
    %9 = vector.shape_cast %8 : vector<1x128x128xf32> to vector<128x128xf32>
    %cst_7 = arith.constant dense<0.000000e+00> : vector<128x128xf32>
    %10 = tpu.matmul %9, %7, %cst_7 {dimension_numbers = #tpu.dot_dimension_numbers<[1], [0], [0], [1], [0, 0, 1, 1], [], []>} : vector<128x128xf32>, vector<128x128xf32>, vector<128x128xf32> -> vector<128x128xf32>
    %c0_8 = arith.constant 0 : index
    %c0_9 = arith.constant 0 : index
    %c0_10 = arith.constant 0 : index
    %11 = vector.load %arg5[%c0_8, %c0_9, %c0_10] : memref<3x128x128xf32, #tpu.memory_space<vmem>>, vector<1x128x128xf32>
    %12 = vector.shape_cast %11 : vector<1x128x128xf32> to vector<128x128xf32>
    %13 = arith.addf %10, %12 : vector<128x128xf32>
    %cst_11 = arith.constant 0.00999999977 : f32
    %14 = vector.broadcast %cst_11 : f32 to vector<128x128xf32>
    %15 = arith.mulf %14, %13 : vector<128x128xf32>
    %16 = arith.maximumf %13, %15 : vector<128x128xf32>
    %c0_12 = arith.constant 0 : index
    %c0_13 = arith.constant 0 : index
    %17 = vector.load %arg3[%c0_12, %c0_13] : memref<128x128xf32, #tpu.memory_space<vmem>>, vector<128x128xf32>
    %cst_14 = arith.constant dense<0.000000e+00> : vector<128x128xf32>
    %18 = tpu.matmul %16, %17, %cst_14 {dimension_numbers = #tpu.dot_dimension_numbers<[1], [0], [0], [1], [0, 0, 1, 1], [], []>} : vector<128x128xf32>, vector<128x128xf32>, vector<128x128xf32> -> vector<128x128xf32>
    %c1 = arith.constant 1 : index
    %c0_15 = arith.constant 0 : index
    %c0_16 = arith.constant 0 : index
    %19 = vector.load %arg4[%c1, %c0_15, %c0_16] : memref<3x128x128xf32, #tpu.memory_space<vmem>>, vector<1x128x128xf32>
    %20 = vector.shape_cast %19 : vector<1x128x128xf32> to vector<128x128xf32>
    %cst_17 = arith.constant dense<0.000000e+00> : vector<128x128xf32>
    %21 = tpu.matmul %20, %18, %cst_17 {dimension_numbers = #tpu.dot_dimension_numbers<[1], [0], [0], [1], [0, 0, 1, 1], [], []>} : vector<128x128xf32>, vector<128x128xf32>, vector<128x128xf32> -> vector<128x128xf32>
    %c1_18 = arith.constant 1 : index
    %c0_19 = arith.constant 0 : index
    %c0_20 = arith.constant 0 : index
    %22 = vector.load %arg5[%c1_18, %c0_19, %c0_20] : memref<3x128x128xf32, #tpu.memory_space<vmem>>, vector<1x128x128xf32>
    %23 = vector.shape_cast %22 : vector<1x128x128xf32> to vector<128x128xf32>
    %24 = arith.addf %21, %23 : vector<128x128xf32>
    %cst_21 = arith.constant 0.00999999977 : f32
    %25 = vector.broadcast %cst_21 : f32 to vector<128x128xf32>
    %26 = arith.mulf %25, %24 : vector<128x128xf32>
    %27 = arith.maximumf %24, %26 : vector<128x128xf32>
    %c2 = arith.constant 2 : index
    %c0_22 = arith.constant 0 : index
    %c0_23 = arith.constant 0 : index
    %28 = vector.load %arg4[%c2, %c0_22, %c0_23] : memref<3x128x128xf32, #tpu.memory_space<vmem>>, vector<1x128x128xf32>
    %29 = vector.shape_cast %28 : vector<1x128x128xf32> to vector<128x128xf32>
    %cst_24 = arith.constant dense<0.000000e+00> : vector<128x128xf32>
    %30 = tpu.matmul %29, %27, %cst_24 {dimension_numbers = #tpu.dot_dimension_numbers<[1], [0], [0], [1], [0, 0, 1, 1], [], []>} : vector<128x128xf32>, vector<128x128xf32>, vector<128x128xf32> -> vector<128x128xf32>
    %c2_25 = arith.constant 2 : index
    %c0_26 = arith.constant 0 : index
    %c0_27 = arith.constant 0 : index
    %31 = vector.load %arg5[%c2_25, %c0_26, %c0_27] : memref<3x128x128xf32, #tpu.memory_space<vmem>>, vector<1x128x128xf32>
    %32 = vector.shape_cast %31 : vector<1x128x128xf32> to vector<128x128xf32>
    %33 = arith.addf %30, %32 : vector<128x128xf32>
    %34 = arith.index_cast %1 : i32 to index
    %c0_28 = arith.constant 0 : index
    %35 = vector.load %arg6[%34, %c0_28] : memref<128x128xf32, #tpu.memory_space<vmem>>, vector<128x128xf32>
    tpu.vector_store %arg6[%34, %c0_28], %33 {strides = array<i32>} : memref<128x128xf32, #tpu.memory_space<vmem>>, vector<128x128xf32>,
    %c1_i32 = arith.constant 1 : i32
    return
  }
  func.func @transform_0(%arg0: i32) -> (i32, i32) {
    %c0_i32 = arith.constant 0 : i32
    %c0_i32_0 = arith.constant 0 : i32
    return %arg0, %c0_i32 : i32, i32
  }
  func.func @transform_1(%arg0: i32) -> (i32, i32) {
    %c0_i32 = arith.constant 0 : i32
    %c0_i32_0 = arith.constant 0 : i32
    %c0_i32_1 = arith.constant 0 : i32
    return %c0_i32, %c0_i32_0 : i32, i32
  }
  func.func @transform_2(%arg0: i32) -> (i32, i32) {
    %c0_i32 = arith.constant 0 : i32
    %c0_i32_0 = arith.constant 0 : i32
    %c0_i32_1 = arith.constant 0 : i32
    return %c0_i32, %c0_i32_0 : i32, i32
  }
  func.func @transform_3(%arg0: i32) -> (i32, i32, i32) {
    %c0_i32 = arith.constant 0 : i32
    %c0_i32_0 = arith.constant 0 : i32
    %c0_i32_1 = arith.constant 0 : i32
    %c0_i32_2 = arith.constant 0 : i32
    return %c0_i32, %c0_i32_0, %c0_i32_1 : i32, i32, i32
  }
  func.func @transform_4(%arg0: i32) -> (i32, i32, i32) {
    %c0_i32 = arith.constant 0 : i32
    %c0_i32_0 = arith.constant 0 : i32
    %c0_i32_1 = arith.constant 0 : i32
    %c0_i32_2 = arith.constant 0 : i32
    return %c0_i32, %c0_i32_0, %c0_i32_1 : i32, i32, i32
  }
  func.func @transform_5(%arg0: i32) -> (i32, i32) {
    %c0_i32 = arith.constant 0 : i32
    %c0_i32_0 = arith.constant 0 : i32
    return %arg0, %c0_i32 : i32, i32
  }
}

</mosaic_0001>

<bundles_post_ra>
// kernel: tpu_custom_call.1
= control target key start
LH: loop header
LB: loop body
LE: loop exit
PB: predicated region body
PF: predicated region fallthrough
CT: control target
= control target key end

     0   :  { %10 = vsyncpa [#allocation3], 0  ;;  %s2025_s0 = inlined_call_operand.hbm [shape: f32[128,128], index: 0, kind: input, shape index: {}]   ;;  %s2026_s1 = inlined_call_operand.hbm [shape: f32[128,128], index: 1, kind: input, shape index: {}]   ;;  %s2027_s2 = inlined_call_operand.hbm [shape: f32[128,128], index: 2, kind: input, shape index: {}]   ;;  %s2028_s3 = inlined_call_operand.hbm [shape: f32[3,128,128], index: 3, kind: input, shape index: {}]   ;;  %s2029_s4 = inlined_call_operand.hbm [shape: f32[3,128,128], index: 4, kind: input, shape index: {}]   ;;  %s2030_s5 = inlined_call_operand.hbm [shape: f32[128,128], index: 5, kind: output, shape index: {}]  }
   0x1   :  { %11 = vsyncpa [#allocation6], 0 }
   0x2   :  { %12 = vsyncpa [#allocation9], 0 }
   0x3   :  { %13 = vsyncpa [#allocation4], 0  ;;  %s1841_s18 = smov [#allocation5]   ;;  %s1842_s20 = smov [#allocation8]  }
   0x4   :  { %s31_s19 = sshll.u32 %s1841_s18, 4  ;;  %s55_s21 = sshll.u32 %s1842_s20, 4  ;;  %s32_s19 = int_to_ptr.vmem [resolvable:$true] %s31_s19  ;;  %s1879_s21 = int_to_ptr.vmem [resolvable:$true] %s55_s21 }
   0x5   :  { %s1701_s24 = scalar_lea.hbm %s2026_s1, 2048 }
   0x6   :  { %p1702_p0 = scmp.ne.s32.totalorder %s2026_s1, %s1701_s24  ;;  %p1705_p1 = scmp.lt.u32.totalorder %s1701_s24, %s2026_s1 }
   0x8   :  { %p1707_p2 = pnand %p1705_p1, %p1702_p0 }
   0xa   :  { %1710 = shalt.err (!%p1707_p2)
}
   0xb   :  { %s1711_s29 = scalar_lea.vmem %s32_s19, 2048  ;;  %p1716_p4 = scmp.lt.s32.totalorder %s32_s19, %s32_s19 }
   0xc   :  { %p1712_p3 = scmp.ne.s32.totalorder %s32_s19, %s1711_s29  ;;  %p1717_p5 = scmp.lt.s32.totalorder %s1711_s29, %s1711_s29 }
   0xe   :  { %p1718_p6 = por %p1717_p5, %p1716_p4 }
  0x10   :  { %p1719_p7 = pnand %p1718_p6, %p1712_p3 }
  0x12   :  { %1722 = shalt.err (!%p1719_p7)
}
  0x13   :  { %s1843_s30 = smov 128   ;;  %s1844_s6 = smov 8  }
  0x14   :  { %37 = dma.hbm_to_vmem [thread:$0]  %s2026_s1, 2048, %s32_s19, [#allocation6], %s1843_s30, %s1843_s30, %s1844_s6  }
  0x15   :  { %s1723_s11 = scalar_lea.hbm %s2028_s3, 6144 }
  0x16   :  { %p1724_p8 = scmp.ne.s32.totalorder %s2028_s3, %s1723_s11  ;;  %p1727_p9 = scmp.lt.u32.totalorder %s1723_s11, %s2028_s3 }
  0x18   :  { %p1729_p10 = pnand %p1727_p9, %p1724_p8 }
  0x1a   :  { %1732 = shalt.err (!%p1729_p10)
}
  0x1b   :  { %s1733_s16 = scalar_lea.vmem %s1879_s21, 6144  ;;  %p1738_p12 = scmp.lt.s32.totalorder %s1879_s21, %s1879_s21 }
  0x1c   :  { %p1734_p11 = scmp.ne.s32.totalorder %s1879_s21, %s1733_s16  ;;  %p1739_p13 = scmp.lt.s32.totalorder %s1733_s16, %s1733_s16 }
  0x1e   :  { %p1740_p0 = por %p1739_p13, %p1738_p12 }
  0x20   :  { %p1741_p1 = pnand %p1740_p0, %p1734_p11 }
  0x22   :  { %1744 = shalt.err (!%p1741_p1)
}
  0x23   :  { %61 = dma.hbm_to_vmem [thread:$0]  %s2028_s3, 6144, %s1879_s21, [#allocation9], %s1843_s30, %s1843_s30, %s1844_s6  }
  0x24   :  { %s1845_s18 = smov [#allocation2]   ;;  %s1846_s20 = smov [#allocation7]  }
  0x25   :  { %s19_s19 = sshll.u32 %s1845_s18, 4  ;;  %s43_s22 = sshll.u32 %s1846_s20, 4  ;;  %s20_s19 = int_to_ptr.vmem [resolvable:$true] %s19_s19  ;;  %s1916_s22 = int_to_ptr.vmem [resolvable:$true] %s43_s22 }
  0x26   :  { %s1745_s25 = scalar_lea.hbm %s2025_s0, 2048 }
  0x27   :  { %p1746_p2 = scmp.ne.s32.totalorder %s2025_s0, %s1745_s25  ;;  %p1749_p3 = scmp.lt.u32.totalorder %s1745_s25, %s2025_s0 }
  0x29   :  { %p1751_p4 = pnand %p1749_p3, %p1746_p2 }
  0x2b   :  { %1754 = shalt.err (!%p1751_p4)
}
  0x2c   :  { %s1755_s3 = scalar_lea.vmem %s20_s19, 2048  ;;  %p1760_p6 = scmp.lt.s32.totalorder %s20_s19, %s20_s19 }
  0x2d   :  { %p1756_p5 = scmp.ne.s32.totalorder %s20_s19, %s1755_s3  ;;  %p1761_p7 = scmp.lt.s32.totalorder %s1755_s3, %s1755_s3 }
  0x2f   :  { %p1762_p8 = por %p1761_p7, %p1760_p6 }
  0x31   :  { %p1763_p9 = pnand %p1762_p8, %p1756_p5 }
  0x33   :  { %1766 = shalt.err (!%p1763_p9)
}
  0x34   :  { %25 = dma.hbm_to_vmem [thread:$0]  %s2025_s0, 2048, %s20_s19, [#allocation3], %s1843_s30, %s1843_s30, %s1844_s6  }
  0x35   :  { %s1767_s10 = scalar_lea.hbm %s2027_s2, 2048 }
  0x36   :  { %p1768_p10 = scmp.ne.s32.totalorder %s2027_s2, %s1767_s10  ;;  %p1771_p11 = scmp.lt.u32.totalorder %s1767_s10, %s2027_s2 }
  0x38   :  { %p1773_p12 = pnand %p1771_p11, %p1768_p10 }
  0x3a   :  { %1776 = shalt.err (!%p1773_p12)
}
  0x3b   :  { %s1777_s15 = scalar_lea.vmem %s1916_s22, 2048  ;;  %p1782_p0 = scmp.lt.s32.totalorder %s1916_s22, %s1916_s22 }
  0x3c   :  { %p1778_p13 = scmp.ne.s32.totalorder %s1916_s22, %s1777_s15  ;;  %p1783_p1 = scmp.lt.s32.totalorder %s1777_s15, %s1777_s15 }
  0x3e   :  { %p1784_p2 = por %p1783_p1, %p1782_p0 }
  0x40   :  { %p1785_p3 = pnand %p1784_p2, %p1778_p13 }
  0x42   :  { %1788 = shalt.err (!%p1785_p3)
}
  0x43   :  { %49 = dma.hbm_to_vmem [thread:$0]  %s2027_s2, 2048, %s1916_s22, [#allocation6], %s1843_s30, %s1843_s30, %s1844_s6  }
  0x44   :  { %s1847_s1 = smov [#allocation10]   ;;  %s1789_s20 = scalar_lea.hbm %s2029_s4, 6144 }
  0x45   :  { %s67_s17 = sshll.u32 %s1847_s1, 4  ;;  %p1790_p4 = scmp.ne.s32.totalorder %s2029_s4, %s1789_s20  ;;  %s68_s17 = int_to_ptr.vmem [resolvable:$true] %s67_s17 }
  0x46   :  { %p1793_p5 = scmp.lt.u32.totalorder %s1789_s20, %s2029_s4 }
  0x48   :  { %p1795_p6 = pnand %p1793_p5, %p1790_p4 }
  0x4a   :  { %1798 = shalt.err (!%p1795_p6)
}
  0x4b   :  { %s1799_s27 = scalar_lea.vmem %s68_s17, 6144  ;;  %p1804_p8 = scmp.lt.s32.totalorder %s68_s17, %s68_s17 }
  0x4c   :  { %p1800_p7 = scmp.ne.s32.totalorder %s68_s17, %s1799_s27  ;;  %p1805_p9 = scmp.lt.s32.totalorder %s1799_s27, %s1799_s27 }
  0x4e   :  { %p1806_p10 = por %p1805_p9, %p1804_p8 }
  0x50   :  { %p1807_p11 = pnand %p1806_p10, %p1800_p7 }
  0x52   :  { %1810 = shalt.err (!%p1807_p11)
}
  0x53   :  { %73 = dma.hbm_to_vmem [thread:$0]  %s2029_s4, 6144, %s68_s17, [#allocation9], %s1843_s30, %s1843_s30, %s1844_s6  }
  0x54   :  { %1833 = dma.done.wait [#allocation3], 2048  }
  0x55   :  { %1834 = vsyncadd [#allocation3], 4294965248 }
  0x56   :  { %1835 = dma.done.wait [#allocation6], 4096  }
  0x57   :  { %1836 = vsyncadd [#allocation6], 4294963200 }
  0x58   :  { %1837 = dma.done.wait [#allocation9], 12288  }
  0x59   :  { %1838 = vsyncadd [#allocation9], 4294955008  ;;  %v137_v0 = vld [vmem:[#allocation7] sm:$0xff]  ;;  %v138_v1 = vld [vmem:[#allocation7 + $0x8] sm:$0xff]  ;;  %s1848_s4 = smov [#allocation11]  }
  0x5a   :  { %v139_v2 = vld [vmem:[#allocation7 + $0x10] sm:$0xff]  ;;  %v1517_v3 = vpack.c.bf16 %v138_v1, %v137_v0  ;;  %v140_v4 = vld [vmem:[#allocation7 + $0x18] sm:$0xff]  ;;  %v141_v6 = vld [vmem:[#allocation7 + $0x20] sm:$0xff]  ;;  %s1063_s28 = sshll.u32 %s1848_s4, 4  ;;  %s1064_s28 = int_to_ptr.vmem [resolvable:$true] %s1063_s28 }
  0x5b   :  { %v1968_v5 = vpack.c.bf16 %v140_v4, %v139_v2  ;;  %v142_v7 = vld [vmem:[#allocation7 + $0x28] sm:$0xff]  ;;  %v89_v9 = vld [vmem:[#allocation2] sm:$0xff]  ;;  %v143_v11 = vld [vmem:[#allocation7 + $0x30] sm:$0xff]  ;;  %s1811_s29 = scalar_lea.vmem %s1064_s28, 2048  ;;  %p1816_p13 = scmp.lt.s32.totalorder %s1064_s28, %s1064_s28 }
  0x5c   :  { %1518 = vmatprep.subr.bf16.mxu0 %v1517_v3  ;;  %v1971_v8 = vpack.c.bf16 %v142_v7, %v141_v6  ;;  %v105_v10 = vld [vmem:[#allocation5] sm:$0xff]  ;;  %v144_v12 = vld [vmem:[#allocation7 + $0x38] sm:$0xff]  ;;  %v146_v16 = vld [vmem:[#allocation7 + $0x48] sm:$0xff]  ;;  %p1812_p12 = scmp.ne.s32.totalorder %s1064_s28, %s1811_s29  ;;  %p1817_p0 = scmp.lt.s32.totalorder %s1811_s29, %s1811_s29 }
  0x5d   :  { %1520 = vmatpush3.bf16.msra.mxu0 %v1517_v3  ;;  %v121_v13 = vadd.f32 %v105_v10, %v89_v9  ;;  %v1975_v14 = vpack.c.bf16 %v144_v12, %v143_v11  ;;  %v145_v15 = vld [vmem:[#allocation7 + $0x40] sm:$0xff]  ;;  %v147_v18 = vld [vmem:[#allocation7 + $0x50] sm:$0xff]  ;;  %v148_v19 = vld [vmem:[#allocation7 + $0x58] sm:$0xff] }
  0x5e   :  { %1522 = vmatprep.subr.bf16.mxu0 %v1968_v5  ;;  %v1979_v17 = vpack.c.bf16 %v146_v16, %v145_v15  ;;  %v1983_v20 = vpack.c.bf16 %v148_v19, %v147_v18  ;;  %v149_v21 = vld [vmem:[#allocation7 + $0x60] sm:$0xff]  ;;  %v150_v22 = vld [vmem:[#allocation7 + $0x68] sm:$0xff]  ;;  %v151_v24 = vld [vmem:[#allocation7 + $0x70] sm:$0xff]  ;;  %p1818_p1 = por %p1817_p0, %p1816_p13 }
  0x5f   :  { %1269 = vmatprep.mubr.f32.mxu0 %v121_v13  ;;  %v1987_v23 = vpack.c.bf16 %v150_v22, %v149_v21  ;;  %v152_v25 = vld [vmem:[#allocation7 + $0x78] sm:$0xff]  ;;  %v90_v27 = vld [vmem:[#allocation2 + $0x8] sm:$0xff]  ;;  %v91_v29 = vld [vmem:[#allocation2 + $0x10] sm:$0xff] }
  0x60   :  { %v1991_v26 = vpack.c.bf16 %v152_v25, %v151_v24  ;;  %v106_v28 = vld [vmem:[#allocation5 + $0x8] sm:$0xff]  ;;  %v107_v30 = vld [vmem:[#allocation5 + $0x10] sm:$0xff]  ;;  %v92_v33 = vld [vmem:[#allocation2 + $0x18] sm:$0xff]  ;;  %p1819_p2 = pnand %p1818_p1, %p1812_p12 }
  0x61   :  { %1524 = vmatpush3.bf16.msra.mxu0 %v1968_v5  ;;  %v122_v31 = vadd.f32 %v106_v28, %v90_v27  ;;  %v123_v32 = vadd.f32 %v107_v30, %v91_v29  ;;  %v108_v34 = vld [vmem:[#allocation5 + $0x18] sm:$0xff]  ;;  %v93_v35 = vld [vmem:[#allocation2 + $0x20] sm:$0xff]  ;;  %v94_v39 = vld [vmem:[#allocation2 + $0x28] sm:$0xff] }
  0x62   :  { %1526 = vmatprep.subr.bf16.mxu0 %v1971_v8  ;;  %v109_v36 = vld [vmem:[#allocation5 + $0x20] sm:$0xff]  ;;  %v124_v37 = vadd.f32 %v108_v34, %v92_v33  ;;  %v110_v40 = vld [vmem:[#allocation5 + $0x28] sm:$0xff]  ;;  %v95_v41 = vld [vmem:[#allocation2 + $0x30] sm:$0xff] }
  0x63   :  { %v125_v38 = vadd.f32 %v109_v36, %v93_v35  ;;  %v111_v42 = vld [vmem:[#allocation5 + $0x30] sm:$0xff]  ;;  %v126_v43 = vadd.f32 %v110_v40, %v94_v39  ;;  %v96_v45 = vld [vmem:[#allocation2 + $0x38] sm:$0xff]  ;;  %v97_v47 = vld [vmem:[#allocation2 + $0x40] sm:$0xff] }
  0x64   :  { %v127_v44 = vadd.f32 %v111_v42, %v95_v41  ;;  %v112_v46 = vld [vmem:[#allocation5 + $0x38] sm:$0xff]  ;;  %v113_v48 = vld [vmem:[#allocation5 + $0x40] sm:$0xff]  ;;  %v98_v51 = vld [vmem:[#allocation2 + $0x48] sm:$0xff] }
  0x65   :  { %1528 = vmatpush3.bf16.msra.mxu0 %v1971_v8  ;;  %v128_v49 = vadd.f32 %v112_v46, %v96_v45  ;;  %v129_v50 = vadd.f32 %v113_v48, %v97_v47  ;;  %v114_v52 = vld [vmem:[#allocation5 + $0x48] sm:$0xff]  ;;  %v99_v53 = vld [vmem:[#allocation2 + $0x50] sm:$0xff]  ;;  %v100_v57 = vld [vmem:[#allocation2 + $0x58] sm:$0xff] }
  0x66   :  { %1530 = vmatprep.subr.bf16.mxu0 %v1975_v14  ;;  %v115_v54 = vld [vmem:[#allocation5 + $0x50] sm:$0xff]  ;;  %v130_v55 = vadd.f32 %v114_v52, %v98_v51  ;;  %v116_v58 = vld [vmem:[#allocation5 + $0x58] sm:$0xff]  ;;  %v101_v59 = vld [vmem:[#allocation2 + $0x60] sm:$0xff] }
  0x67   :  { %v131_v56 = vadd.f32 %v115_v54, %v99_v53  ;;  %v117_v60 = vld [vmem:[#allocation5 + $0x60] sm:$0xff]  ;;  %v132_v61 = vadd.f32 %v116_v58, %v100_v57  ;;  %v102_v63 = vld [vmem:[#allocation2 + $0x68] sm:$0xff]  ;;  %v103_v1 = vld [vmem:[#allocation2 + $0x70] sm:$0xff] }
  0x68   :  { %v133_v62 = vadd.f32 %v117_v60, %v101_v59  ;;  %v118_v0 = vld [vmem:[#allocation5 + $0x68] sm:$0xff]  ;;  %v119_v2 = vld [vmem:[#allocation5 + $0x70] sm:$0xff]  ;;  %v120_v6 = vld [vmem:[#allocation5 + $0x78] sm:$0xff] }
  0x69   :  { %1532 = vmatpush3.bf16.msra.mxu0 %v1975_v14  ;;  %v135_v4 = vadd.f32 %v119_v2, %v103_v1  ;;  %v299_v33 = vld [vmem:[#allocation8 + $0x8] sm:$0xff]  ;;  %v300_v34 = vld [vmem:[#allocation8 + $0x10] sm:$0xff]  ;;  %v301_v35 = vld [vmem:[#allocation8 + $0x18] sm:$0xff] }
  0x6a   :  { %1534 = vmatprep.subr.bf16.mxu0 %v1979_v17  ;;  %v302_v36 = vld [vmem:[#allocation8 + $0x20] sm:$0xff]  ;;  %v305_v39 = vld [vmem:[#allocation8 + $0x38] sm:$0xff]  ;;  %v307_v41 = vld [vmem:[#allocation8 + $0x48] sm:$0xff] }
  0x6b   :  { %v306_v40 = vld [vmem:[#allocation8 + $0x40] sm:$0xff]  ;;  %v308_v42 = vld [vmem:[#allocation8 + $0x50] sm:$0xff]  ;;  %v311_v45 = vld [vmem:[#allocation8 + $0x68] sm:$0xff] }
  0x6c   :  { %v312_v46 = vld [vmem:[#allocation8 + $0x70] sm:$0xff]  ;;  %v313_v47 = vld [vmem:[#allocation8 + $0x78] sm:$0xff]  ;;  %v315_v48 = vld [vmem:[#allocation10 + $0x8] sm:$0xff] }
  0x6d   :  { %1536 = vmatpush3.bf16.msra.mxu0 %v1979_v17  ;;  %v317_v54 = vld [vmem:[#allocation10 + $0x18] sm:$0xff]  ;;  %v318_v2 = vld [vmem:[#allocation10 + $0x20] sm:$0xff] }
  0x6e   :  { %1538 = vmatprep.subr.bf16.mxu0 %v1983_v20 }
  0x71   :  { %1540 = vmatpush3.bf16.msra.mxu0 %v1983_v20 }
  0x72   :  { %1542 = vmatprep.subr.bf16.mxu0 %v1987_v23 }
  0x75   :  { %1544 = vmatpush3.bf16.msra.mxu0 %v1987_v23 }
  0x76   :  { %1546 = vmatprep.subr.bf16.mxu0 %v1991_v26 }
  0x79   :  { %1548 = vmatpush3.bf16.msra.mxu0 %v1991_v26 }
  0x7a   :  { %1582 = vmatprep.subr.bf16.mxu0 %v1517_v3 }
  0x7c   :  { %1270 = vmatmul.mubr.f32.vlgmr.msra.gmra.mrb[0].mxu0 %v122_v31 }
  0x7d   :  { %1272 = vmatprep.mubr.f32.mxu0 %v123_v32  ;;  %1584 = vmatpush3.bf16.msra.mxu0 %v1517_v3  ;;  %v134_v3 = vadd.f32 %v118_v0, %v102_v63  ;;  %v319_v63 = vld [vmem:[#allocation10 + $0x28] sm:$0xff] }
  0x7e   :  { %1586 = vmatprep.subr.bf16.mxu0 %v1968_v5 }
  0x80   :  { %1273 = vmatmul.mubr.f32.gmra.mrb[2].mxu0 %v124_v37  ;;  %v303_v37 = vld [vmem:[#allocation8 + $0x28] sm:$0xff] }
  0x81   :  { %1275 = vmatprep.mubr.f32.mxu0 %v125_v38  ;;  %1588 = vmatpush3.bf16.msra.mxu0 %v1968_v5  ;;  %v104_v5 = vld [vmem:[#allocation2 + $0x78] sm:$0xff]  ;;  %v304_v38 = vld [vmem:[#allocation8 + $0x30] sm:$0xff] }
  0x82   :  { %1590 = vmatprep.subr.bf16.mxu0 %v1971_v8  ;;  %v136_v7 = vadd.f32 %v120_v6, %v104_v5 }
  0x84   :  { %1276 = vmatmul.mubr.f32.gmra.mrb[4].mxu0 %v126_v43  ;;  %v309_v43 = vld [vmem:[#allocation8 + $0x58] sm:$0xff] }
  0x85   :  { %1278 = vmatprep.mubr.f32.mxu0 %v127_v44  ;;  %1592 = vmatpush3.bf16.msra.mxu0 %v1971_v8  ;;  %v298_v8 = vld [vmem:[#allocation8] sm:$0xff] }
  0x86   :  { %1594 = vmatprep.subr.bf16.mxu0 %v1975_v14  ;;  %1325 = vmatprep.mubr.f32.mxu1 %v298_v8  ;;  %v310_v44 = vld [vmem:[#allocation8 + $0x60] sm:$0xff] }
  0x88   :  { %1279 = vmatmul.mubr.f32.gmra.mrb[6].mxu0 %v128_v49  ;;  %v314_v49 = vld [vmem:[#allocation10] sm:$0xff] }
  0x89   :  { %1281 = vmatprep.mubr.f32.mxu0 %v129_v50  ;;  %1596 = vmatpush3.bf16.msra.mxu0 %v1975_v14 }
  0x8a   :  { %1598 = vmatprep.subr.bf16.mxu0 %v1979_v17 }
  0x8c   :  { %1282 = vmatmul.mubr.f32.gmra.mrb[8].mxu0 %v130_v55 }
  0x8d   :  { %1284 = vmatprep.mubr.f32.mxu0 %v131_v56  ;;  %1600 = vmatpush3.bf16.msra.mxu0 %v1979_v17  ;;  %v316_v56 = vld [vmem:[#allocation10 + $0x10] sm:$0xff] }
  0x8e   :  { %1602 = vmatprep.subr.bf16.mxu0 %v1983_v20 }
  0x90   :  { %1285 = vmatmul.mubr.f32.gmra.mrb[10].mxu0 %v132_v61 }
  0x91   :  { %1287 = vmatprep.mubr.f32.mxu0 %v133_v62  ;;  %1604 = vmatpush3.bf16.msra.mxu0 %v1983_v20 }
  0x92   :  { %1606 = vmatprep.subr.bf16.mxu0 %v1987_v23 }
  0x94   :  { %1288 = vmatmul.mubr.f32.gmra.mrb[12].mxu0 %v134_v3 }
  0x95   :  { %1290 = vmatprep.mubr.f32.mxu0 %v135_v4  ;;  %1608 = vmatpush3.bf16.msra.mxu0 %v1987_v23 }
  0x96   :  { %1610 = vmatprep.subr.bf16.mxu0 %v1991_v26 }
  0x98   :  { %1291 = vmatmul.mubr.f32.gmra.mrb[14].mxu0 %v136_v7 }
  0x99   :  { %1612 = vmatpush3.bf16.msra.mxu0 %v1991_v26 }
 0x14f   :  { %v1271_v9 = vpop.f32.mrb[0].mxu0 }
 0x150   :  { %v219_v10 = vpop.f32.mrb[1].mxu0 }
 0x151   :  { %v1549_v11 = vpack.c.bf16 %v1271_v9, %v219_v10  ;;  %v321_v9 = vld [vmem:[#allocation10 + $0x38] sm:$0xff] }
 0x153   :  { %v1274_v12 = vpop.f32.mrb[2].mxu0  ;;  %1550 = vmatprep.subr.bf16.mxu1 %v1549_v11 }
 0x154   :  { %v229_v13 = vpop.f32.mrb[3].mxu0  ;;  %1552 = vmatpush3.bf16.msra.mxu1 %v1549_v11 }
 0x155   :  { %v1553_v14 = vpack.c.bf16 %v1274_v12, %v229_v13  ;;  %v320_v12 = vld [vmem:[#allocation10 + $0x30] sm:$0xff] }
 0x157   :  { %v1277_v15 = vpop.f32.mrb[4].mxu0  ;;  %1554 = vmatprep.subr.bf16.mxu1 %v1553_v14 }
 0x158   :  { %v239_v16 = vpop.f32.mrb[5].mxu0  ;;  %1556 = vmatpush3.bf16.msra.mxu1 %v1553_v14 }
 0x159   :  { %v1557_v17 = vpack.c.bf16 %v1277_v15, %v239_v16 }
 0x15b   :  { %v1280_v18 = vpop.f32.mrb[6].mxu0  ;;  %1558 = vmatprep.subr.bf16.mxu1 %v1557_v17 }
 0x15c   :  { %v249_v19 = vpop.f32.mrb[7].mxu0  ;;  %1560 = vmatpush3.bf16.msra.mxu1 %v1557_v17 }
 0x15d   :  { %v1561_v20 = vpack.c.bf16 %v1280_v18, %v249_v19  ;;  %v323_v19 = vld [vmem:[#allocation10 + $0x48] sm:$0xff] }
 0x15f   :  { %v1283_v21 = vpop.f32.mrb[8].mxu0  ;;  %1562 = vmatprep.subr.bf16.mxu1 %v1561_v20 }
 0x160   :  { %v259_v22 = vpop.f32.mrb[9].mxu0  ;;  %1564 = vmatpush3.bf16.msra.mxu1 %v1561_v20 }
 0x161   :  { %v1565_v23 = vpack.c.bf16 %v1283_v21, %v259_v22  ;;  %v322_v22 = vld [vmem:[#allocation10 + $0x40] sm:$0xff] }
 0x163   :  { %v1286_v24 = vpop.f32.mrb[10].mxu0  ;;  %1566 = vmatprep.subr.bf16.mxu1 %v1565_v23 }
 0x164   :  { %v269_v25 = vpop.f32.mrb[11].mxu0  ;;  %1568 = vmatpush3.bf16.msra.mxu1 %v1565_v23 }
 0x165   :  { %v1569_v26 = vpack.c.bf16 %v1286_v24, %v269_v25 }
 0x167   :  { %v1289_v27 = vpop.f32.mrb[12].mxu0  ;;  %1570 = vmatprep.subr.bf16.mxu1 %v1569_v26 }
 0x168   :  { %v279_v28 = vpop.f32.mrb[13].mxu0  ;;  %1572 = vmatpush3.bf16.msra.mxu1 %v1569_v26 }
 0x169   :  { %v1573_v29 = vpack.c.bf16 %v1289_v27, %v279_v28 }
 0x16b   :  { %v1292_v30 = vpop.f32.mrb[14].mxu0  ;;  %1574 = vmatprep.subr.bf16.mxu1 %v1573_v29 }
 0x16c   :  { %v289_v31 = vpop.f32.mrb[15].mxu0  ;;  %1576 = vmatpush3.bf16.msra.mxu1 %v1573_v29  ;;  %v325_v29 = vld [vmem:[#allocation10 + $0x58] sm:$0xff] }
 0x16d   :  { %v1577_v32 = vpack.c.bf16 %v1292_v30, %v289_v31 }
 0x16f   :  { %1578 = vmatprep.subr.bf16.mxu1 %v1577_v32 }
 0x170   :  { %1580 = vmatpush3.bf16.msra.mxu1 %v1577_v32  ;;  %v324_v32 = vld [vmem:[#allocation10 + $0x50] sm:$0xff] }
 0x173   :  { %1326 = vmatmul.mubr.f32.vlgmr.msra.gmra.mrb[0].mxu1 %v299_v33 }
 0x174   :  { %1328 = vmatprep.mubr.f32.mxu1 %v300_v34 }
 0x177   :  { %1329 = vmatmul.mubr.f32.gmra.mrb[2].mxu1 %v301_v35 }
 0x178   :  { %1331 = vmatprep.mubr.f32.mxu1 %v302_v36 }
 0x17b   :  { %1332 = vmatmul.mubr.f32.gmra.mrb[4].mxu1 %v303_v37 }
 0x17c   :  { %1334 = vmatprep.mubr.f32.mxu1 %v304_v38 }
 0x17f   :  { %1335 = vmatmul.mubr.f32.gmra.mrb[6].mxu1 %v305_v39  ;;  %v327_v39 = vld [vmem:[#allocation10 + $0x68] sm:$0xff] }
 0x180   :  { %1337 = vmatprep.mubr.f32.mxu1 %v306_v40 }
 0x183   :  { %1338 = vmatmul.mubr.f32.gmra.mrb[8].mxu1 %v307_v41 }
 0x184   :  { %1340 = vmatprep.mubr.f32.mxu1 %v308_v42  ;;  %v326_v42 = vld [vmem:[#allocation10 + $0x60] sm:$0xff] }
 0x187   :  { %1341 = vmatmul.mubr.f32.gmra.mrb[10].mxu1 %v309_v43 }
 0x188   :  { %1343 = vmatprep.mubr.f32.mxu1 %v310_v44 }
 0x18b   :  { %1344 = vmatmul.mubr.f32.gmra.mrb[12].mxu1 %v311_v45 }
 0x18c   :  { %1346 = vmatprep.mubr.f32.mxu1 %v312_v46 }
 0x18f   :  { %1347 = vmatmul.mubr.f32.gmra.mrb[14].mxu1 %v313_v47 }
 0x246   :  { %v1327_v50 = vpop.f32.mrb[0].mxu1 }
 0x247   :  { %v402_v51 = vadd.f32 %v1327_v50, %v315_v48  ;;  %v396_v52 = vpop.f32.mrb[1].mxu1 }
 0x248   :  { %v397_v53 = vadd.f32 %v396_v52, %v314_v49  ;;  %v329_v49 = vld [vmem:[#allocation10 + $0x78] sm:$0xff]  ;;  %v328_v52 = vld [vmem:[#allocation10 + $0x70] sm:$0xff] }
 0x249   :  { %v476_v55 = vmul.f32 0.01, %v402_v51 }
 0x24a   :  { %v475_v57 = vmul.f32 0.01, %v397_v53  ;;  %v1330_v58 = vpop.f32.mrb[2].mxu1 }
 0x24b   :  { %v412_v59 = vadd.f32 %v1330_v58, %v317_v54  ;;  %v406_v60 = vpop.f32.mrb[3].mxu1  ;;  %v492_v0 = vmax.f32 %v402_v51, %v476_v55 }
 0x24c   :  { %v491_v61 = vmax.f32 %v397_v53, %v475_v57  ;;  %v407_v62 = vadd.f32 %v406_v60, %v316_v56 }
 0x24d   :  { %v478_v1 = vmul.f32 0.01, %v412_v59 }
 0x24e   :  { %v477_v3 = vmul.f32 0.01, %v407_v62  ;;  %v1333_v4 = vpop.f32.mrb[4].mxu1  ;;  %1381 = vmatprep.mubr.f32.mxu0 %v491_v61 }
 0x24f   :  { %v422_v5 = vadd.f32 %v1333_v4, %v319_v63  ;;  %v416_v6 = vpop.f32.mrb[5].mxu1  ;;  %1382 = vmatmul.mubr.f32.vlgmr.msra.gmra.mrb[16].mxu0 %v492_v0  ;;  %v494_v10 = vmax.f32 %v412_v59, %v478_v1  ;;  %v653_v0 = vld [vmem:[#allocation8 + $0x80] sm:$0xff] }
 0x250   :  { %v493_v7 = vmax.f32 %v407_v62, %v477_v3  ;;  %v417_v8 = vadd.f32 %v416_v6, %v318_v2  ;;  %1437 = vmatprep.mubr.f32.mxu1 %v653_v0 }
 0x251   :  { %v480_v11 = vmul.f32 0.01, %v422_v5 }
 0x252   :  { %v479_v13 = vmul.f32 0.01, %v417_v8  ;;  %v1336_v14 = vpop.f32.mrb[6].mxu1  ;;  %1384 = vmatprep.mubr.f32.mxu0 %v493_v7 }
 0x253   :  { %v432_v15 = vadd.f32 %v1336_v14, %v321_v9  ;;  %v426_v16 = vpop.f32.mrb[7].mxu1  ;;  %1385 = vmatmul.mubr.f32.gmra.mrb[18].mxu0 %v494_v10  ;;  %v496_v20 = vmax.f32 %v422_v5, %v480_v11 }
 0x254   :  { %v495_v17 = vmax.f32 %v417_v8, %v479_v13  ;;  %v427_v18 = vadd.f32 %v426_v16, %v320_v12 }
 0x255   :  { %v482_v21 = vmul.f32 0.01, %v432_v15 }
 0x256   :  { %v481_v23 = vmul.f32 0.01, %v427_v18  ;;  %v1339_v24 = vpop.f32.mrb[8].mxu1  ;;  %1387 = vmatprep.mubr.f32.mxu0 %v495_v17 }
 0x257   :  { %v442_v25 = vadd.f32 %v1339_v24, %v323_v19  ;;  %v436_v26 = vpop.f32.mrb[9].mxu1  ;;  %1388 = vmatmul.mubr.f32.gmra.mrb[20].mxu0 %v496_v20  ;;  %v498_v30 = vmax.f32 %v432_v15, %v482_v21 }
 0x258   :  { %v497_v27 = vmax.f32 %v427_v18, %v481_v23  ;;  %v437_v28 = vadd.f32 %v436_v26, %v322_v22  ;;  %v655_v26 = vld [vmem:[#allocation8 + $0x90] sm:$0xff] }
 0x259   :  { %v484_v31 = vmul.f32 0.01, %v442_v25 }
 0x25a   :  { %v483_v33 = vmul.f32 0.01, %v437_v28  ;;  %v1342_v34 = vpop.f32.mrb[10].mxu1  ;;  %1390 = vmatprep.mubr.f32.mxu0 %v497_v27  ;;  %v656_v27 = vld [vmem:[#allocation8 + $0x98] sm:$0xff] }
 0x25b   :  { %v452_v35 = vadd.f32 %v1342_v34, %v325_v29  ;;  %v446_v36 = vpop.f32.mrb[11].mxu1  ;;  %1391 = vmatmul.mubr.f32.gmra.mrb[22].mxu0 %v498_v30  ;;  %v500_v40 = vmax.f32 %v442_v25, %v484_v31  ;;  %v654_v25 = vld [vmem:[#allocation8 + $0x88] sm:$0xff]  ;;  %v659_v30 = vld [vmem:[#allocation8 + $0xb0] sm:$0xff]  ;;  %v660_v31 = vld [vmem:[#allocation8 + $0xb8] sm:$0xff] }
 0x25c   :  { %v499_v37 = vmax.f32 %v437_v28, %v483_v33  ;;  %v447_v38 = vadd.f32 %v446_v36, %v324_v32  ;;  %v657_v28 = vld [vmem:[#allocation8 + $0xa0] sm:$0xff]  ;;  %v658_v29 = vld [vmem:[#allocation8 + $0xa8] sm:$0xff]  ;;  %v663_v34 = vld [vmem:[#allocation8 + $0xd0] sm:$0xff] }
 0x25d   :  { %v486_v41 = vmul.f32 0.01, %v452_v35  ;;  %v661_v32 = vld [vmem:[#allocation8 + $0xc0] sm:$0xff]  ;;  %v662_v33 = vld [vmem:[#allocation8 + $0xc8] sm:$0xff] }
 0x25e   :  { %v485_v43 = vmul.f32 0.01, %v447_v38  ;;  %v1345_v44 = vpop.f32.mrb[12].mxu1  ;;  %1393 = vmatprep.mubr.f32.mxu0 %v499_v37  ;;  %v665_v36 = vld [vmem:[#allocation8 + $0xe0] sm:$0xff]  ;;  %v666_v37 = vld [vmem:[#allocation8 + $0xe8] sm:$0xff] }
 0x25f   :  { %v462_v45 = vadd.f32 %v1345_v44, %v327_v39  ;;  %v456_v46 = vpop.f32.mrb[13].mxu1  ;;  %1394 = vmatmul.mubr.f32.gmra.mrb[24].mxu0 %v500_v40  ;;  %v502_v50 = vmax.f32 %v452_v35, %v486_v41  ;;  %v664_v35 = vld [vmem:[#allocation8 + $0xd8] sm:$0xff]  ;;  %v864_v40 = vld [vmem:[#allocation8 + $0x100] sm:$0xff] }
 0x260   :  { %v501_v47 = vmax.f32 %v447_v38, %v485_v43  ;;  %v457_v48 = vadd.f32 %v456_v46, %v326_v42  ;;  %v667_v38 = vld [vmem:[#allocation8 + $0xf0] sm:$0xff]  ;;  %v668_v39 = vld [vmem:[#allocation8 + $0xf8] sm:$0xff]  ;;  %v872_v41 = vld [vmem:[#allocation8 + $0x140] sm:$0xff] }
 0x261   :  { %v488_v51 = vmul.f32 0.01, %v462_v45  ;;  %v671_v42 = vld [vmem:[#allocation10 + $0x88] sm:$0xff]  ;;  %v670_v43 = vld [vmem:[#allocation10 + $0x80] sm:$0xff] }
 0x262   :  { %v487_v53 = vmul.f32 0.01, %v457_v48  ;;  %v1348_v54 = vpop.f32.mrb[14].mxu1  ;;  %1396 = vmatprep.mubr.f32.mxu0 %v501_v47 }
 0x263   :  { %v472_v55 = vadd.f32 %v1348_v54, %v329_v49  ;;  %v466_v56 = vpop.f32.mrb[15].mxu1  ;;  %1397 = vmatmul.mubr.f32.gmra.mrb[26].mxu0 %v502_v50  ;;  %v504_v59 = vmax.f32 %v462_v45, %v488_v51  ;;  %v672_v50 = vld [vmem:[#allocation10 + $0x90] sm:$0xff] }
 0x264   :  { %v503_v57 = vmax.f32 %v457_v48, %v487_v53  ;;  %v467_v58 = vadd.f32 %v466_v56, %v328_v52  ;;  %v673_v48 = vld [vmem:[#allocation10 + $0x98] sm:$0xff] }
 0x265   :  { %v490_v60 = vmul.f32 0.01, %v472_v55 }
 0x266   :  { %v489_v61 = vmul.f32 0.01, %v467_v58  ;;  %1399 = vmatprep.mubr.f32.mxu0 %v503_v57 }
 0x267   :  { %1400 = vmatmul.mubr.f32.gmra.mrb[28].mxu0 %v504_v59  ;;  %v506_v63 = vmax.f32 %v472_v55, %v490_v60  ;;  %v674_v60 = vld [vmem:[#allocation10 + $0xa0] sm:$0xff] }
 0x268   :  { %v505_v62 = vmax.f32 %v467_v58, %v489_v61  ;;  %v675_v58 = vld [vmem:[#allocation10 + $0xa8] sm:$0xff] }
 0x26a   :  { %1402 = vmatprep.mubr.f32.mxu0 %v505_v62 }
 0x26b   :  { %1403 = vmatmul.mubr.f32.gmra.mrb[30].mxu0 %v506_v63 }
 0x26c   :  { %1493 = vmatprep.mubr.f32.mxu0 %v864_v40  ;;  %v682_v40 = vld [vmem:[#allocation10 + $0xe0] sm:$0xff] }
 0x322   :  { %v1383_v1 = vpop.f32.mrb[16].mxu0 }
 0x323   :  { %v573_v2 = vpop.f32.mrb[17].mxu0 }
 0x324   :  { %v1613_v3 = vpack.c.bf16 %v1383_v1, %v573_v2 }
 0x326   :  { %v1386_v4 = vpop.f32.mrb[18].mxu0  ;;  %1614 = vmatprep.subr.bf16.mxu1 %v1613_v3 }
 0x327   :  { %v583_v5 = vpop.f32.mrb[19].mxu0  ;;  %1616 = vmatpush3.bf16.msra.mxu1 %v1613_v3 }
 0x328   :  { %v1617_v6 = vpack.c.bf16 %v1386_v4, %v583_v5  ;;  %v677_v5 = vld [vmem:[#allocation10 + $0xb8] sm:$0xff] }
 0x32a   :  { %v1389_v7 = vpop.f32.mrb[20].mxu0  ;;  %1618 = vmatprep.subr.bf16.mxu1 %v1617_v6 }
 0x32b   :  { %v593_v8 = vpop.f32.mrb[21].mxu0  ;;  %1620 = vmatpush3.bf16.msra.mxu1 %v1617_v6 }
 0x32c   :  { %v1621_v9 = vpack.c.bf16 %v1389_v7, %v593_v8  ;;  %v676_v7 = vld [vmem:[#allocation10 + $0xb0] sm:$0xff] }
 0x32e   :  { %v1392_v10 = vpop.f32.mrb[22].mxu0  ;;  %1622 = vmatprep.subr.bf16.mxu1 %v1621_v9 }
 0x32f   :  { %v603_v11 = vpop.f32.mrb[23].mxu0  ;;  %1624 = vmatpush3.bf16.msra.mxu1 %v1621_v9 }
 0x330   :  { %v1625_v12 = vpack.c.bf16 %v1392_v10, %v603_v11 }
 0x332   :  { %v1395_v13 = vpop.f32.mrb[24].mxu0  ;;  %1626 = vmatprep.subr.bf16.mxu1 %v1625_v12 }
 0x333   :  { %v613_v14 = vpop.f32.mrb[25].mxu0  ;;  %1628 = vmatpush3.bf16.msra.mxu1 %v1625_v12 }
 0x334   :  { %v1629_v15 = vpack.c.bf16 %v1395_v13, %v613_v14 }
 0x336   :  { %v1398_v16 = vpop.f32.mrb[26].mxu0  ;;  %1630 = vmatprep.subr.bf16.mxu1 %v1629_v15 }
 0x337   :  { %v623_v17 = vpop.f32.mrb[27].mxu0  ;;  %1632 = vmatpush3.bf16.msra.mxu1 %v1629_v15 }
 0x338   :  { %v1633_v18 = vpack.c.bf16 %v1398_v16, %v623_v17  ;;  %v679_v16 = vld [vmem:[#allocation10 + $0xc8] sm:$0xff] }
 0x33a   :  { %v1401_v19 = vpop.f32.mrb[28].mxu0  ;;  %1634 = vmatprep.subr.bf16.mxu1 %v1633_v18 }
 0x33b   :  { %v633_v20 = vpop.f32.mrb[29].mxu0  ;;  %1636 = vmatpush3.bf16.msra.mxu1 %v1633_v18  ;;  %v678_v18 = vld [vmem:[#allocation10 + $0xc0] sm:$0xff] }
 0x33c   :  { %v1637_v21 = vpack.c.bf16 %v1401_v19, %v633_v20 }
 0x33e   :  { %v1404_v22 = vpop.f32.mrb[30].mxu0  ;;  %1638 = vmatprep.subr.bf16.mxu1 %v1637_v21 }
 0x33f   :  { %v643_v23 = vpop.f32.mrb[31].mxu0  ;;  %1640 = vmatpush3.bf16.msra.mxu1 %v1637_v21 }
 0x340   :  { %v1641_v24 = vpack.c.bf16 %v1404_v22, %v643_v23 }
 0x342   :  { %1642 = vmatprep.subr.bf16.mxu1 %v1641_v24 }
 0x343   :  { %1644 = vmatpush3.bf16.msra.mxu1 %v1641_v24 }
 0x346   :  { %1438 = vmatmul.mubr.f32.vlgmr.msra.gmra.mrb[16].mxu1 %v654_v25 }
 0x347   :  { %1440 = vmatprep.mubr.f32.mxu1 %v655_v26 }
 0x34a   :  { %1441 = vmatmul.mubr.f32.gmra.mrb[18].mxu1 %v656_v27  ;;  %v681_v27 = vld [vmem:[#allocation10 + $0xd8] sm:$0xff] }
 0x34b   :  { %1443 = vmatprep.mubr.f32.mxu1 %v657_v28 }
 0x34e   :  { %1444 = vmatmul.mubr.f32.gmra.mrb[20].mxu1 %v658_v29  ;;  %v680_v29 = vld [vmem:[#allocation10 + $0xd0] sm:$0xff] }
 0x34f   :  { %1446 = vmatprep.mubr.f32.mxu1 %v659_v30 }
 0x352   :  { %1447 = vmatmul.mubr.f32.gmra.mrb[22].mxu1 %v660_v31 }
 0x353   :  { %1449 = vmatprep.mubr.f32.mxu1 %v661_v32 }
 0x356   :  { %1450 = vmatmul.mubr.f32.gmra.mrb[24].mxu1 %v662_v33 }
 0x357   :  { %1452 = vmatprep.mubr.f32.mxu1 %v663_v34 }
 0x35a   :  { %1453 = vmatmul.mubr.f32.gmra.mrb[26].mxu1 %v664_v35 }
 0x35b   :  { %1455 = vmatprep.mubr.f32.mxu1 %v665_v36 }
 0x35e   :  { %1456 = vmatmul.mubr.f32.gmra.mrb[28].mxu1 %v666_v37 }
 0x35f   :  { %1458 = vmatprep.mubr.f32.mxu1 %v667_v38  ;;  %v683_v38 = vld [vmem:[#allocation10 + $0xe8] sm:$0xff] }
 0x362   :  { %1459 = vmatmul.mubr.f32.gmra.mrb[30].mxu1 %v668_v39 }
 0x363   :  { %1505 = vmatprep.mubr.f32.mxu1 %v872_v41 }
 0x419   :  { %v1439_v44 = vpop.f32.mrb[16].mxu1 }
 0x41a   :  { %v758_v45 = vadd.f32 %v1439_v44, %v671_v42  ;;  %v752_v46 = vpop.f32.mrb[17].mxu1 }
 0x41b   :  { %v753_v47 = vadd.f32 %v752_v46, %v670_v43 }
 0x41c   :  { %v832_v49 = vmul.f32 0.01, %v758_v45 }
 0x41d   :  { %v831_v51 = vmul.f32 0.01, %v753_v47  ;;  %v1442_v52 = vpop.f32.mrb[18].mxu1 }
 0x41e   :  { %v848_v53 = vmax.f32 %v758_v45, %v832_v49  ;;  %v768_v54 = vadd.f32 %v1442_v52, %v673_v48  ;;  %v762_v55 = vpop.f32.mrb[19].mxu1  ;;  %v685_v49 = vld [vmem:[#allocation10 + $0xf8] sm:$0xff] }
 0x41f   :  { %v847_v56 = vmax.f32 %v753_v47, %v831_v51  ;;  %v763_v57 = vadd.f32 %v762_v55, %v672_v50  ;;  %v684_v51 = vld [vmem:[#allocation10 + $0xf0] sm:$0xff] }
 0x420   :  { %v834_v59 = vmul.f32 0.01, %v768_v54 }
 0x421   :  { %v1645_v61 = vpack.c.bf16 %v848_v53, %v847_v56  ;;  %v833_v62 = vmul.f32 0.01, %v763_v57  ;;  %v1445_v63 = vpop.f32.mrb[20].mxu1 }
 0x422   :  { %v850_v0 = vmax.f32 %v768_v54, %v834_v59  ;;  %v778_v1 = vadd.f32 %v1445_v63, %v675_v58  ;;  %v772_v2 = vpop.f32.mrb[21].mxu1 }
 0x423   :  { %v849_v3 = vmax.f32 %v763_v57, %v833_v62  ;;  %v773_v4 = vadd.f32 %v772_v2, %v674_v60  ;;  %1646 = vmatprep.subr.bf16.mxu0 %v1645_v61  ;;  %1677 = vmatprep.subr.bf16.mxu1 %v1645_v61  ;;  %v865_v2 = vld [vmem:[#allocation8 + $0x108] sm:$0xff] }
 0x424   :  { %v836_v6 = vmul.f32 0.01, %v778_v1  ;;  %1648 = vmatpush3.bf16.msra.mxu0 %v1645_v61  ;;  %1685 = vmatpush3.bf16.msra.mxu1 %v1645_v61 }
 0x425   :  { %v1649_v8 = vpack.c.bf16 %v850_v0, %v849_v3  ;;  %v835_v9 = vmul.f32 0.01, %v773_v4  ;;  %v1448_v10 = vpop.f32.mrb[22].mxu1  ;;  %v873_v3 = vld [vmem:[#allocation8 + $0x148] sm:$0xff] }
 0x426   :  { %v852_v11 = vmax.f32 %v778_v1, %v836_v6  ;;  %v788_v12 = vadd.f32 %v1448_v10, %v677_v5  ;;  %v782_v13 = vpop.f32.mrb[23].mxu1  ;;  %v874_v5 = vld [vmem:[#allocation8 + $0x150] sm:$0xff]  ;;  %v867_v6 = vld [vmem:[#allocation8 + $0x118] sm:$0xff]  ;;  %v869_v10 = vld [vmem:[#allocation8 + $0x128] sm:$0xff] }
 0x427   :  { %v851_v14 = vmax.f32 %v773_v4, %v835_v9  ;;  %v783_v15 = vadd.f32 %v782_v13, %v676_v7  ;;  %1650 = vmatprep.subr.bf16.mxu0 %v1649_v8  ;;  %1678 = vmatprep.subr.bf16.mxu1 %v1649_v8  ;;  %v866_v4 = vld [vmem:[#allocation8 + $0x110] sm:$0xff]  ;;  %v875_v7 = vld [vmem:[#allocation8 + $0x158] sm:$0xff]  ;;  %v876_v9 = vld [vmem:[#allocation8 + $0x160] sm:$0xff] }
 0x428   :  { %v838_v17 = vmul.f32 0.01, %v788_v12  ;;  %1652 = vmatpush3.bf16.msra.mxu0 %v1649_v8  ;;  %1686 = vmatpush3.bf16.msra.mxu1 %v1649_v8  ;;  %v868_v8 = vld [vmem:[#allocation8 + $0x120] sm:$0xff]  ;;  %v878_v13 = vld [vmem:[#allocation8 + $0x170] sm:$0xff] }
 0x429   :  { %v1653_v19 = vpack.c.bf16 %v852_v11, %v851_v14  ;;  %v837_v20 = vmul.f32 0.01, %v783_v15  ;;  %v1451_v21 = vpop.f32.mrb[24].mxu1  ;;  %v877_v11 = vld [vmem:[#allocation8 + $0x168] sm:$0xff]  ;;  %v871_v14 = vld [vmem:[#allocation8 + $0x138] sm:$0xff] }
 0x42a   :  { %v854_v22 = vmax.f32 %v788_v12, %v838_v17  ;;  %v798_v23 = vadd.f32 %v1451_v21, %v679_v16  ;;  %v792_v24 = vpop.f32.mrb[25].mxu1  ;;  %v870_v12 = vld [vmem:[#allocation8 + $0x130] sm:$0xff]  ;;  %v882_v16 = vld [vmem:[#allocation10 + $0x108] sm:$0xff] }
 0x42b   :  { %v853_v25 = vmax.f32 %v783_v15, %v837_v20  ;;  %v793_v26 = vadd.f32 %v792_v24, %v678_v18  ;;  %1654 = vmatprep.subr.bf16.mxu0 %v1653_v19  ;;  %1679 = vmatprep.subr.bf16.mxu1 %v1653_v19  ;;  %v879_v15 = vld [vmem:[#allocation8 + $0x178] sm:$0xff]  ;;  %v890_v17 = vld [vmem:[#allocation10 + $0x148] sm:$0xff]  ;;  %v881_v18 = vld [vmem:[#allocation10 + $0x100] sm:$0xff] }
 0x42c   :  { %v840_v28 = vmul.f32 0.01, %v798_v23  ;;  %1656 = vmatpush3.bf16.msra.mxu0 %v1653_v19  ;;  %1687 = vmatpush3.bf16.msra.mxu1 %v1653_v19  ;;  %v889_v19 = vld [vmem:[#allocation10 + $0x140] sm:$0xff] }
 0x42d   :  { %v1657_v30 = vpack.c.bf16 %v854_v22, %v853_v25  ;;  %v839_v31 = vmul.f32 0.01, %v793_v26  ;;  %v1454_v32 = vpop.f32.mrb[26].mxu1 }
 0x42e   :  { %v856_v33 = vmax.f32 %v798_v23, %v840_v28  ;;  %v808_v34 = vadd.f32 %v1454_v32, %v681_v27  ;;  %v802_v35 = vpop.f32.mrb[27].mxu1  ;;  %v884_v28 = vld [vmem:[#allocation10 + $0x118] sm:$0xff] }
 0x42f   :  { %v855_v36 = vmax.f32 %v793_v26, %v839_v31  ;;  %v803_v37 = vadd.f32 %v802_v35, %v680_v29  ;;  %1658 = vmatprep.subr.bf16.mxu0 %v1657_v30  ;;  %1680 = vmatprep.subr.bf16.mxu1 %v1657_v30  ;;  %v892_v29 = vld [vmem:[#allocation10 + $0x158] sm:$0xff]  ;;  %v891_v31 = vld [vmem:[#allocation10 + $0x150] sm:$0xff] }
 0x430   :  { %v842_v39 = vmul.f32 0.01, %v808_v34  ;;  %1660 = vmatpush3.bf16.msra.mxu0 %v1657_v30  ;;  %1688 = vmatpush3.bf16.msra.mxu1 %v1657_v30  ;;  %v883_v30 = vld [vmem:[#allocation10 + $0x110] sm:$0xff] }
 0x431   :  { %v1661_v41 = vpack.c.bf16 %v856_v33, %v855_v36  ;;  %v841_v42 = vmul.f32 0.01, %v803_v37  ;;  %v1457_v43 = vpop.f32.mrb[28].mxu1 }
 0x432   :  { %v858_v44 = vmax.f32 %v808_v34, %v842_v39  ;;  %v818_v45 = vadd.f32 %v1457_v43, %v683_v38  ;;  %v812_v46 = vpop.f32.mrb[29].mxu1  ;;  %v893_v43 = vld [vmem:[#allocation10 + $0x160] sm:$0xff] }
 0x433   :  { %v857_v47 = vmax.f32 %v803_v37, %v841_v42  ;;  %v813_v48 = vadd.f32 %v812_v46, %v682_v40  ;;  %1662 = vmatprep.subr.bf16.mxu0 %v1661_v41  ;;  %1681 = vmatprep.subr.bf16.mxu1 %v1661_v41  ;;  %v886_v40 = vld [vmem:[#allocation10 + $0x128] sm:$0xff]  ;;  %v885_v42 = vld [vmem:[#allocation10 + $0x120] sm:$0xff] }
 0x434   :  { %v844_v50 = vmul.f32 0.01, %v818_v45  ;;  %1664 = vmatpush3.bf16.msra.mxu0 %v1661_v41  ;;  %1689 = vmatpush3.bf16.msra.mxu1 %v1661_v41  ;;  %v894_v41 = vld [vmem:[#allocation10 + $0x168] sm:$0xff] }
 0x435   :  { %v1665_v52 = vpack.c.bf16 %v858_v44, %v857_v47  ;;  %v843_v53 = vmul.f32 0.01, %v813_v48  ;;  %v1460_v54 = vpop.f32.mrb[30].mxu1 }
 0x436   :  { %v860_v55 = vmax.f32 %v818_v45, %v844_v50  ;;  %v828_v56 = vadd.f32 %v1460_v54, %v685_v49  ;;  %v822_v57 = vpop.f32.mrb[31].mxu1  ;;  %v887_v54 = vld [vmem:[#allocation10 + $0x130] sm:$0xff] }
 0x437   :  { %v859_v58 = vmax.f32 %v813_v48, %v843_v53  ;;  %v823_v59 = vadd.f32 %v822_v57, %v684_v51  ;;  %1666 = vmatprep.subr.bf16.mxu0 %v1665_v52  ;;  %1682 = vmatprep.subr.bf16.mxu1 %v1665_v52  ;;  %v896_v53 = vld [vmem:[#allocation10 + $0x178] sm:$0xff] }
 0x438   :  { %v846_v60 = vmul.f32 0.01, %v828_v56  ;;  %1668 = vmatpush3.bf16.msra.mxu0 %v1665_v52  ;;  %1690 = vmatpush3.bf16.msra.mxu1 %v1665_v52  ;;  %v888_v52 = vld [vmem:[#allocation10 + $0x138] sm:$0xff] }
 0x439   :  { %v1669_v61 = vpack.c.bf16 %v860_v55, %v859_v58  ;;  %v845_v62 = vmul.f32 0.01, %v823_v59  ;;  %v895_v55 = vld [vmem:[#allocation10 + $0x170] sm:$0xff] }
 0x43a   :  { %v862_v63 = vmax.f32 %v828_v56, %v846_v60 }
 0x43b   :  { %v861_v0 = vmax.f32 %v823_v59, %v845_v62  ;;  %1670 = vmatprep.subr.bf16.mxu0 %v1669_v61  ;;  %1683 = vmatprep.subr.bf16.mxu1 %v1669_v61 }
 0x43c   :  { %1672 = vmatpush3.bf16.msra.mxu0 %v1669_v61  ;;  %1691 = vmatpush3.bf16.msra.mxu1 %v1669_v61 }
 0x43d   :  { %v1673_v1 = vpack.c.bf16 %v862_v63, %v861_v0 }
 0x43f   :  { %1674 = vmatprep.subr.bf16.mxu0 %v1673_v1  ;;  %1684 = vmatprep.subr.bf16.mxu1 %v1673_v1 }
 0x440   :  { %1676 = vmatpush3.bf16.msra.mxu0 %v1673_v1  ;;  %1692 = vmatpush3.bf16.msra.mxu1 %v1673_v1 }
 0x443   :  { %1494 = vmatmul.mubr.f32.vlgmr.msra.gmra.mrb[32].mxu0 %v865_v2  ;;  %1506 = vmatmul.mubr.f32.vlgmr.msra.gmra.mrb[32].mxu1 %v873_v3 }
 0x444   :  { %1496 = vmatprep.mubr.f32.mxu0 %v866_v4  ;;  %1508 = vmatprep.mubr.f32.mxu1 %v874_v5 }
 0x447   :  { %1497 = vmatmul.mubr.f32.gmra.mrb[34].mxu0 %v867_v6  ;;  %1509 = vmatmul.mubr.f32.gmra.mrb[34].mxu1 %v875_v7 }
 0x448   :  { %1499 = vmatprep.mubr.f32.mxu0 %v868_v8  ;;  %1511 = vmatprep.mubr.f32.mxu1 %v876_v9 }
 0x44b   :  { %1500 = vmatmul.mubr.f32.gmra.mrb[36].mxu0 %v869_v10  ;;  %1512 = vmatmul.mubr.f32.gmra.mrb[36].mxu1 %v877_v11 }
 0x44c   :  { %1502 = vmatprep.mubr.f32.mxu0 %v870_v12  ;;  %1514 = vmatprep.mubr.f32.mxu1 %v878_v13 }
 0x44f   :  { %1503 = vmatmul.mubr.f32.gmra.mrb[38].mxu0 %v871_v14  ;;  %1515 = vmatmul.mubr.f32.gmra.mrb[38].mxu1 %v879_v15 }
 0x516   :  { %v1495_v20 = vpop.f32.mrb[32].mxu0  ;;  %v1507_v21 = vpop.f32.mrb[32].mxu1 }
 0x517   :  { %v969_v22 = vadd.f32 %v1495_v20, %v882_v16  ;;  %v1009_v23 = vadd.f32 %v1507_v21, %v890_v17  ;;  %v963_v24 = vpop.f32.mrb[33].mxu0  ;;  %v1003_v25 = vpop.f32.mrb[33].mxu1 }
 0x518   :  { %v964_v26 = vadd.f32 %v963_v24, %v881_v18  ;;  %v1004_v27 = vadd.f32 %v1003_v25, %v889_v19 }
 0x519   :  { %1043 = vst [vmem:[#allocation11 + $0x8] sm:$0xff] %v969_v22  ;;  %1051 = vst [vmem:[#allocation11 + $0x48] sm:$0xff] %v1009_v23 }
 0x51a   :  { %1042 = vst [vmem:[#allocation11] sm:$0xff] %v964_v26  ;;  %1050 = vst [vmem:[#allocation11 + $0x40] sm:$0xff] %v1004_v27  ;;  %v1498_v32 = vpop.f32.mrb[34].mxu0  ;;  %v1510_v33 = vpop.f32.mrb[34].mxu1 }
 0x51b   :  { %v979_v34 = vadd.f32 %v1498_v32, %v884_v28  ;;  %v1019_v35 = vadd.f32 %v1510_v33, %v892_v29  ;;  %v973_v36 = vpop.f32.mrb[35].mxu0  ;;  %v1013_v37 = vpop.f32.mrb[35].mxu1 }
 0x51c   :  { %v974_v38 = vadd.f32 %v973_v36, %v883_v30  ;;  %v1014_v39 = vadd.f32 %v1013_v37, %v891_v31 }
 0x51d   :  { %1045 = vst [vmem:[#allocation11 + $0x18] sm:$0xff] %v979_v34  ;;  %1053 = vst [vmem:[#allocation11 + $0x58] sm:$0xff] %v1019_v35 }
 0x51e   :  { %1044 = vst [vmem:[#allocation11 + $0x10] sm:$0xff] %v974_v38  ;;  %1052 = vst [vmem:[#allocation11 + $0x50] sm:$0xff] %v1014_v39  ;;  %v1501_v44 = vpop.f32.mrb[36].mxu0  ;;  %v1513_v45 = vpop.f32.mrb[36].mxu1 }
 0x51f   :  { %v989_v46 = vadd.f32 %v1501_v44, %v886_v40  ;;  %v1029_v47 = vadd.f32 %v1513_v45, %v894_v41  ;;  %v983_v48 = vpop.f32.mrb[37].mxu0  ;;  %v1023_v49 = vpop.f32.mrb[37].mxu1 }
 0x520   :  { %v984_v50 = vadd.f32 %v983_v48, %v885_v42  ;;  %v1024_v51 = vadd.f32 %v1023_v49, %v893_v43 }
 0x521   :  { %1047 = vst [vmem:[#allocation11 + $0x28] sm:$0xff] %v989_v46  ;;  %1055 = vst [vmem:[#allocation11 + $0x68] sm:$0xff] %v1029_v47 }
 0x522   :  { %1046 = vst [vmem:[#allocation11 + $0x20] sm:$0xff] %v984_v50  ;;  %1054 = vst [vmem:[#allocation11 + $0x60] sm:$0xff] %v1024_v51  ;;  %v1504_v56 = vpop.f32.mrb[38].mxu0  ;;  %v1516_v57 = vpop.f32.mrb[38].mxu1 }
 0x523   :  { %v999_v58 = vadd.f32 %v1504_v56, %v888_v52  ;;  %v1039_v59 = vadd.f32 %v1516_v57, %v896_v53  ;;  %v993_v60 = vpop.f32.mrb[39].mxu0  ;;  %v1033_v61 = vpop.f32.mrb[39].mxu1 }
 0x524   :  { %v994_v62 = vadd.f32 %v993_v60, %v887_v54  ;;  %v1034_v63 = vadd.f32 %v1033_v61, %v895_v55 }
 0x525   :  { %1049 = vst [vmem:[#allocation11 + $0x38] sm:$0xff] %v999_v58  ;;  %1057 = vst [vmem:[#allocation11 + $0x78] sm:$0xff] %v1039_v59 }
 0x526   :  { %1048 = vst [vmem:[#allocation11 + $0x30] sm:$0xff] %v994_v62  ;;  %1056 = vst [vmem:[#allocation11 + $0x70] sm:$0xff] %v1034_v63 }
 0x527   :  { %1822 = shalt.err (!%p1819_p2)
}
 0x528   :  { %s1823_s7 = scalar_lea.hbm %s2030_s5, 2048 }
 0x529   :  { %p1824_p3 = scmp.ne.s32.totalorder %s2030_s5, %s1823_s7  ;;  %p1827_p4 = scmp.lt.u32.totalorder %s1823_s7, %s2030_s5 }
 0x52b   :  { %p1829_p5 = pnand %p1827_p4, %p1824_p3 }
 0x52d   :  { %1832 = shalt.err (!%p1829_p5)
}
 0x52e   :  { %1069 = dma.vmem_to_hbm [thread:$0]  %s1064_s28, 2048, %s2030_s5, [#allocation4], %s1843_s30, %s1843_s30, %s1844_s6  }
 0x52f   :  { %1839 = dma.done.wait [#allocation4], 2048  }
 0x530   :  { %1840 = vsyncadd [#allocation4], 4294965248 }
 0x531   :  { %1073 = vsyncpa [#allocation3], 1 }
 0x532   :  { %1074 = vsyncpa [#allocation6], 1 }
 0x533   :  { %1075 = vsyncpa [#allocation9], 1 }
 0x534   :  { %1076 = vsyncpa [#allocation4], 1 }

</bundles_post_ra>
